<compile_context>
chip_gen: v6e
topology: v6e:2x2x1
jax: 0.10.0
libtpu: 0.0.40
codegen_flags: <defaults>
</compile_context>

<pallas_src>
import functools

import jax
import jax.numpy as jnp
from jax.experimental import pallas as pl
from jax.experimental.pallas import tpu as pltpu

LN_EPS = 1e-5  # PyTorch nn.LayerNorm default


def _round_up(a, b):
    return (a + b - 1) // b * b


def _choose_tm(rows, d_pad, dout_pad, x_bytes, out_bytes, w_bytes,
               budget_bytes=20 * 1024 * 1024):
    """Largest power-of-two row tile whose working set fits the VMEM budget."""
    rows8 = _round_up(rows, 8)
    # Weight + LN params are VMEM-resident (constant index_map) but may still
    # be double-buffered by the pipeline machinery -> count them twice.
    resident = 2 * (d_pad * dout_pad * w_bytes + dout_pad * 4 + 2 * d_pad * 4)
    tm = 1024
    while tm > 8:
        # double-buffered x / out tiles + ~4 f32-sized intermediates of x tile
        work = (2 * tm * (d_pad * x_bytes + dout_pad * out_bytes)
                + 4 * tm * d_pad * 4)
        if resident + work <= budget_bytes:
            break
        tm //= 2
    return min(max(tm, 8), rows8)


def prenorm_kernel(x_ref, g_ref, b_ref, w_ref, wb_ref, o_ref, *, inv_d):
    # x_ref: (TM, Dp) rows; g/b: (1, Dp) f32 LN affine (zero in padded lanes);
    # w_ref: (Dp, Doutp) bf16 Linear weight; wb_ref: (1, Doutp) f32 bias.
    x = x_ref[...].astype(jnp.float32)

    # LayerNorm over the last dim (biased variance, same as PyTorch).
    # Padded lanes of x are zero, so plain sums divided by the *true* D are
    # exact; E[x^2] - mean^2 avoids needing a lane mask for the variance.
    s1 = jnp.sum(x, axis=-1, keepdims=True)
    s2 = jnp.sum(x * x, axis=-1, keepdims=True)
    mean = s1 * inv_d
    var = jnp.maximum(s2 * inv_d - mean * mean, 0.0)
    xn = (x - mean) * jax.lax.rsqrt(var + LN_EPS)

    # gamma/beta are zero in padded lanes -> y is zero there, so the padded
    # rows of W contribute nothing to the GEMM.
    y = xn * g_ref[...] + b_ref[...]

    # fn(norm(x)) -- Linear on the MXU: bf16 operands, f32 accumulation.
    out = jnp.dot(y.astype(w_ref.dtype), w_ref[...],
                  preferred_element_type=jnp.float32)
    out = out + wb_ref[...]
    o_ref[...] = out.astype(o_ref.dtype)


def prenorm_forward(x, gamma, beta, w, wb, *, matmul_dtype=jnp.bfloat16):
    """x: (B, N, D) -> (B, N, Dout).  LN + Linear fused in one Pallas kernel."""
    B, N, D = x.shape
    Dout = w.shape[1]
    rows = B * N

    # Lane-dense padding for loads, MXU N-dim and output stores.
    Dp = _round_up(D, 128)
    Doutp = _round_up(Dout, 128)

    x_bytes = jnp.dtype(x.dtype).itemsize
    out_bytes = x_bytes
    w_bytes = jnp.dtype(matmul_dtype).itemsize
    TM = _choose_tm(rows, Dp, Doutp, x_bytes, out_bytes, w_bytes)
    rows_p = _round_up(rows, TM)

    # Zero-pad everything so every block is full and well-defined.
    x2d = jnp.pad(x.reshape(rows, D), ((0, rows_p - rows), (0, Dp - D)))
    g2d = jnp.pad(gamma.astype(jnp.float32).reshape(1, D),
                  ((0, 0), (0, Dp - D)))
    b2d = jnp.pad(beta.astype(jnp.float32).reshape(1, D),
                  ((0, 0), (0, Dp - D)))
    w_p = jnp.pad(w.astype(matmul_dtype), ((0, Dp - D), (0, Doutp - Dout)))
    wb2d = jnp.pad(wb.astype(jnp.float32).reshape(1, Dout),
                   ((0, 0), (0, Doutp - Dout)))

    kernel = functools.partial(prenorm_kernel, inv_d=float(1.0 / D))

    out2d = pl.pallas_call(
        kernel,
        out_shape=jax.ShapeDtypeStruct((rows_p, Doutp), x.dtype),
        grid_spec=pltpu.PrefetchScalarGridSpec(
            num_scalar_prefetch=0,
            grid=(rows_p // TM,),
            in_specs=[
                pl.BlockSpec((TM, Dp), lambda i: (i, 0)),      # x tile
                pl.BlockSpec((1, Dp), lambda i: (0, 0)),       # gamma (resident)
                pl.BlockSpec((1, Dp), lambda i: (0, 0)),       # beta  (resident)
                pl.BlockSpec((Dp, Doutp), lambda i: (0, 0)),   # W     (resident)
                pl.BlockSpec((1, Doutp), lambda i: (0, 0)),    # bias  (resident)
            ],
            out_specs=pl.BlockSpec((TM, Doutp), lambda i: (i, 0)),
        ),
        compiler_params=pltpu.CompilerParams(
            dimension_semantics=("parallel",),
            vmem_limit_bytes=32 * 1024 * 1024),
    )(x2d, g2d, b2d, w_p, wb2d)

    return out2d[:rows, :Dout].reshape(B, N, Dout)


if __name__ == "__main__":
    # Small shapes consistent with the module: batch=2, seq=8, dim=32.
    B, N, D = 2, 8, 32
    key = jax.random.PRNGKey(0)
    kx, kw, kb = jax.random.split(key, 3)

    x = jax.random.normal(kx, (B, N, D), dtype=jnp.float32)

    # LayerNorm params: PyTorch init (gamma=1, beta=0).
    gamma = jnp.ones((D,), dtype=jnp.float32)
    beta = jnp.zeros((D,), dtype=jnp.float32)

    # fn = Linear(D, D), deterministic synthetic init.
    # TODO(synk): PreNorm wraps an arbitrary `fn`; a Linear layer is fused
    # here as a representative instantiation.
    w = jax.random.normal(kw, (D, D), dtype=jnp.float32) * 0.02
    wb = jax.random.normal(kb, (D,), dtype=jnp.float32) * 0.02

    out = prenorm_forward(x, gamma, beta, w, wb)
    jax.block_until_ready(out)

    # Pure-JAX f32 reference; tolerance loosened for the bf16 GEMM operands.
    mean = jnp.mean(x, axis=-1, keepdims=True)
    var = jnp.mean((x - mean) ** 2, axis=-1, keepdims=True)
    xn = (x - mean) / jnp.sqrt(var + LN_EPS)
    ref = (xn * gamma + beta) @ w + wb
    assert out.shape == ref.shape
    assert jnp.allclose(out, ref, atol=2e-2, rtol=2e-2), (
        float(jnp.max(jnp.abs(out - ref))))

    print("KERNEL_OK")
</pallas_src>

<mosaic_0001>
module attributes {stable_mosaic.version = 11 : i64} {
  func.func @prenorm_kernel(%arg0: i32, %arg1: memref<16x128xf32, #tpu.memory_space<vmem>>, %arg2: memref<1x128xf32, #tpu.memory_space<vmem>>, %arg3: memref<1x128xf32, #tpu.memory_space<vmem>>, %arg4: memref<128x128xbf16, #tpu.memory_space<vmem>>, %arg5: memref<1x128xf32, #tpu.memory_space<vmem>>, %arg6: memref<16x128xf32, #tpu.memory_space<vmem>>) attributes {dimension_semantics = [#tpu.dimension_semantics<parallel>], iteration_bounds = array<i64: 1>, scalar_prefetch = 0 : i64, scratch_operands = 0 : i64, tpu.core_type = #tpu.core_type<tc>, window_params = [{transform_indices = @transform_0, window_bounds = array<i64: 16, 128>}, {pipeline_mode = #tpu.pipeline_mode<synchronous>, transform_indices = @transform_1, window_bounds = array<i64: 1, 128>}, {pipeline_mode = #tpu.pipeline_mode<synchronous>, transform_indices = @transform_2, window_bounds = array<i64: 1, 128>}, {pipeline_mode = #tpu.pipeline_mode<synchronous>, transform_indices = @transform_3, window_bounds = array<i64: 128, 128>}, {pipeline_mode = #tpu.pipeline_mode<synchronous>, transform_indices = @transform_4, window_bounds = array<i64: 1, 128>}, {transform_indices = @transform_5, window_bounds = array<i64: 16, 128>}]} {
    %c0 = arith.constant 0 : index
    %c0_0 = arith.constant 0 : index
    %0 = vector.load %arg1[%c0, %c0_0] : memref<16x128xf32, #tpu.memory_space<vmem>>, vector<16x128xf32>
    %cst = arith.constant dense<0.000000e+00> : vector<16xf32>
    %1 = vector.multi_reduction <add>, %0, %cst [1] : vector<16x128xf32> to vector<16xf32>
    %2 = vector.shape_cast %1 : vector<16xf32> to vector<16x1xf32>
    %3 = arith.mulf %0, %0 : vector<16x128xf32>
    %cst_1 = arith.constant dense<0.000000e+00> : vector<16xf32>
    %4 = vector.multi_reduction <add>, %3, %cst_1 [1] : vector<16x128xf32> to vector<16xf32>
    %5 = vector.shape_cast %4 : vector<16xf32> to vector<16x1xf32>
    %cst_2 = arith.constant 3.125000e-02 : f32
    %6 = vector.broadcast %cst_2 : f32 to vector<16x1xf32>
    %7 = arith.mulf %2, %6 : vector<16x1xf32>
    %cst_3 = arith.constant 3.125000e-02 : f32
    %8 = vector.broadcast %cst_3 : f32 to vector<16x1xf32>
    %9 = arith.mulf %5, %8 : vector<16x1xf32>
    %10 = arith.mulf %7, %7 : vector<16x1xf32>
    %11 = arith.subf %9, %10 : vector<16x1xf32>
    %cst_4 = arith.constant 0.000000e+00 : f32
    %12 = vector.broadcast %cst_4 : f32 to vector<16x1xf32>
    %13 = arith.maximumf %11, %12 : vector<16x1xf32>
    %14 = vector.broadcast %7 : vector<16x1xf32> to vector<16x128xf32>
    %15 = arith.subf %0, %14 : vector<16x128xf32>
    %cst_5 = arith.constant 9.99999974E-6 : f32
    %16 = vector.broadcast %cst_5 : f32 to vector<16x1xf32>
    %17 = arith.addf %13, %16 : vector<16x1xf32>
    %18 = math.rsqrt %17 : vector<16x1xf32>
    %19 = vector.broadcast %18 : vector<16x1xf32> to vector<16x128xf32>
    %20 = arith.mulf %15, %19 : vector<16x128xf32>
    %c0_6 = arith.constant 0 : index
    %c0_7 = arith.constant 0 : index
    %21 = vector.load %arg2[%c0_6, %c0_7] : memref<1x128xf32, #tpu.memory_space<vmem>>, vector<1x128xf32>
    %22 = vector.broadcast %21 : vector<1x128xf32> to vector<16x128xf32>
    %23 = arith.mulf %20, %22 : vector<16x128xf32>
    %c0_8 = arith.constant 0 : index
    %c0_9 = arith.constant 0 : index
    %24 = vector.load %arg3[%c0_8, %c0_9] : memref<1x128xf32, #tpu.memory_space<vmem>>, vector<1x128xf32>
    %25 = vector.broadcast %24 : vector<1x128xf32> to vector<16x128xf32>
    %26 = arith.addf %23, %25 : vector<16x128xf32>
    %27 = arith.truncf %26 : vector<16x128xf32> to vector<16x128xbf16>
    %c0_10 = arith.constant 0 : index
    %c0_11 = arith.constant 0 : index
    %28 = vector.load %arg4[%c0_10, %c0_11] : memref<128x128xbf16, #tpu.memory_space<vmem>>, vector<128x128xbf16>
    %cst_12 = arith.constant dense<0.000000e+00> : vector<16x128xf32>
    %29 = tpu.matmul %27, %28, %cst_12 {dimension_numbers = #tpu.dot_dimension_numbers<[1], [0], [0], [1], [0, 0, 1, 1], [], []>} : vector<16x128xbf16>, vector<128x128xbf16>, vector<16x128xf32> -> vector<16x128xf32>
    %c0_13 = arith.constant 0 : index
    %c0_14 = arith.constant 0 : index
    %30 = vector.load %arg5[%c0_13, %c0_14] : memref<1x128xf32, #tpu.memory_space<vmem>>, vector<1x128xf32>
    %31 = vector.broadcast %30 : vector<1x128xf32> to vector<16x128xf32>
    %32 = arith.addf %29, %31 : vector<16x128xf32>
    %c0_15 = arith.constant 0 : index
    %c0_16 = arith.constant 0 : index
    %33 = vector.load %arg6[%c0_15, %c0_16] : memref<16x128xf32, #tpu.memory_space<vmem>>, vector<16x128xf32>
    tpu.vector_store %arg6[%c0_15, %c0_16], %32 {strides = array<i32>} : memref<16x128xf32, #tpu.memory_space<vmem>>, vector<16x128xf32>,
    return
  }
  func.func @transform_0(%arg0: i32) -> (i32, i32) {
    %c0_i32 = arith.constant 0 : i32
    %c0_i32_0 = arith.constant 0 : i32
    return %arg0, %c0_i32 : i32, i32
  }
  func.func @transform_1(%arg0: i32) -> (i32, i32) {
    %c0_i32 = arith.constant 0 : i32
    %c0_i32_0 = arith.constant 0 : i32
    %c0_i32_1 = arith.constant 0 : i32
    return %c0_i32, %c0_i32_0 : i32, i32
  }
  func.func @transform_2(%arg0: i32) -> (i32, i32) {
    %c0_i32 = arith.constant 0 : i32
    %c0_i32_0 = arith.constant 0 : i32
    %c0_i32_1 = arith.constant 0 : i32
    return %c0_i32, %c0_i32_0 : i32, i32
  }
  func.func @transform_3(%arg0: i32) -> (i32, i32) {
    %c0_i32 = arith.constant 0 : i32
    %c0_i32_0 = arith.constant 0 : i32
    %c0_i32_1 = arith.constant 0 : i32
    return %c0_i32, %c0_i32_0 : i32, i32
  }
  func.func @transform_4(%arg0: i32) -> (i32, i32) {
    %c0_i32 = arith.constant 0 : i32
    %c0_i32_0 = arith.constant 0 : i32
    %c0_i32_1 = arith.constant 0 : i32
    return %c0_i32, %c0_i32_0 : i32, i32
  }
  func.func @transform_5(%arg0: i32) -> (i32, i32) {
    %c0_i32 = arith.constant 0 : i32
    %c0_i32_0 = arith.constant 0 : i32
    return %arg0, %c0_i32 : i32, i32
  }
}

</mosaic_0001>

<bundles_post_ra>
// kernel: tpu_custom_call.1
= control target key start
LH: loop header
LB: loop body
LE: loop exit
PB: predicated region body
PF: predicated region fallthrough
CT: control target
= control target key end

     0   :  { %10 = vsyncpa [#allocation3], 0  ;;  %s421_s0 = inlined_call_operand.hbm [shape: f32[16,128], index: 0, kind: input, shape index: {}]   ;;  %s422_s1 = inlined_call_operand.vmem [shape: f32[1,128], index: 1, kind: input, shape index: {}]   ;;  %s423_s2 = inlined_call_operand.vmem [shape: f32[1,128], index: 2, kind: input, shape index: {}]   ;;  %s424_s3 = inlined_call_operand.hbm [shape: bf16[128,128], index: 3, kind: input, shape index: {}]   ;;  %s425_s4 = inlined_call_operand.vmem [shape: f32[1,128], index: 4, kind: input, shape index: {}]   ;;  %s426_s5 = inlined_call_operand.hbm [shape: f32[16,128], index: 5, kind: output, shape index: {}]  }
   0x1   :  { %11 = vsyncpa [#allocation6], 0 }
   0x2   :  { %12 = vsyncpa [#allocation4], 0  ;;  %s358_s18 = smov [#allocation2]  }
   0x3   :  { %s18_s19 = sshll.u32 %s358_s18, 4  ;;  %s19_s19 = int_to_ptr.vmem [resolvable:$true] %s18_s19 }
   0x4   :  { %s300_s20 = scalar_lea.vmem %s19_s19, 256  ;;  %p305_p1 = scmp.lt.s32.totalorder %s19_s19, %s19_s19 }
   0x5   :  { %p301_p0 = scmp.ne.s32.totalorder %s19_s19, %s300_s20  ;;  %p306_p2 = scmp.lt.s32.totalorder %s300_s20, %s300_s20 }
   0x7   :  { %p307_p3 = por %p306_p2, %p305_p1 }
   0x9   :  { %p308_p4 = pnand %p307_p3, %p301_p0 }
   0xb   :  { %311 = shalt.err (!%p308_p4)
}
   0xc   :  { %s359_s21 = smov 128   ;;  %s360_s22 = smov 8  }
   0xd   :  { %24 = dma.hbm_to_vmem [thread:$0]  %s421_s0, 256, %s19_s19, [#allocation3], %s359_s21, %s359_s21, %s360_s22  }
   0xe   :  { %s361_s25 = smov [#allocation5]  }
   0xf   :  { %s34_s26 = sshll.u32 %s361_s25, 4  ;;  %s35_s26 = int_to_ptr.vmem [resolvable:$true] %s34_s26 }
  0x10   :  { %s320_s27 = scalar_lea.vmem %s35_s26, 1024  ;;  %p325_p6 = scmp.lt.s32.totalorder %s35_s26, %s35_s26 }
  0x11   :  { %p321_p5 = scmp.ne.s32.totalorder %s35_s26, %s320_s27  ;;  %p326_p7 = scmp.lt.s32.totalorder %s320_s27, %s320_s27 }
  0x13   :  { %p327_p8 = por %p326_p7, %p325_p6 }
  0x15   :  { %p328_p9 = pnand %p327_p8, %p321_p5 }
  0x17   :  { %331 = shalt.err (!%p328_p9)
}
  0x18   :  { %s362_s28 = smov 64   ;;  %s363_s29 = smov 4  }
  0x19   :  { %40 = dma.hbm_to_vmem [thread:$0]  %s424_s3, 1024, %s35_s26, [#allocation6], %s362_s28, %s362_s28, %s363_s29  }
  0x1a   :  { %352 = dma.done.wait [#allocation3], 256  }
  0x1b   :  { %353 = vsyncadd [#allocation3], 4294967040 }
  0x1c   :  { %354 = dma.done.wait [#allocation6], 1024  }
  0x1d   :  { %355 = vsyncadd [#allocation6], 4294966272  ;;  %v50_v0 = vld [vmem:[#allocation2] sm:$0xff]  ;;  %v51_v1 = vld [vmem:[#allocation2 + $0x8] sm:$0xff]  ;;  %v364_v5 = vmov 0.0   ;;  %vm365_vm0 = vmmov 0  }
  0x1e   :  { %52 = vadd.xlane.f32.xlu0 %v50_v0  ;;  %v56_v2 = vmul.f32 %v50_v0, %v50_v0  ;;  %v57_v3 = vmul.f32 %v51_v1, %v51_v1  ;;  %v280_v4 = vld [vmem:[#allocation5 + $0x38] sm:$0xff]   ;;  %251 = vmatprep.subr.bf16.mxu0 %v364_v5  ;;  %v281_v6 = vld [vmem:[#allocation5 + $0x30] sm:$0xff]   ;;  %v282_v7 = vld [vmem:[#allocation5 + $0x28] sm:$0xff]  }
  0x1f   :  { %252 = vmatpush3.bf16.msra.mxu0 %v280_v4  ;;  %v283_v8 = vld [vmem:[#allocation5 + $0x20] sm:$0xff]   ;;  %267 = vmatprep.mubr.msk.bf16.mxu0 %vm365_vm0, %v364_v5  ;;  %v284_v9 = vld [vmem:[#allocation5 + $0x18] sm:$0xff]   ;;  %v285_v10 = vld [vmem:[#allocation5 + $0x10] sm:$0xff]  }
  0x20   :  { %58 = vadd.xlane.f32.xlu1 %v56_v2  ;;  %253 = vmatprep.subr.bf16.mxu0 %v364_v5  ;;  %v286_v11 = vld [vmem:[#allocation5 + $0x8] sm:$0xff]   ;;  %v287_v12 = vld [vmem:[#allocation5] sm:$0xff]   ;;  %v231_v32 = vld [vmem:[%s422_s1] ss:$0 sm:$0xff]  ;;  %s366_s1 = smov [#allocation7]  }
  0x21   :  { %v232_v37 = vld [vmem:[%s423_s2] ss:$0 sm:$0xff]  ;;  %s218_s11 = sshll.u32 %s366_s1, 4  ;;  %s219_s11 = int_to_ptr.vmem [resolvable:$true] %s218_s11 }
  0x22   :  { %54 = vadd.xlane.f32.xlu0 %v51_v1  ;;  %v233_v42 = vld [vmem:[%s425_s4] ss:$0 sm:$0xff]  ;;  %s332_s2 = scalar_lea.vmem %s219_s11, 256  ;;  %p337_p11 = scmp.lt.s32.totalorder %s219_s11, %s219_s11 }
  0x23   :  { %254 = vmatpush3.bf16.msra.mxu0 %v281_v6  ;;  %p333_p10 = scmp.ne.s32.totalorder %s219_s11, %s332_s2  ;;  %p338_p12 = scmp.lt.s32.totalorder %s332_s2, %s332_s2 }
  0x24   :  { %60 = vadd.xlane.f32.xlu1 %v57_v3  ;;  %255 = vmatprep.subr.bf16.mxu0 %v364_v5 }
  0x25   :  { %p339_p13 = por %p338_p12, %p337_p11 }
  0x27   :  { %256 = vmatpush3.bf16.msra.mxu0 %v282_v7  ;;  %p340_p0 = pnand %p339_p13, %p333_p10 }
  0x28   :  { %257 = vmatprep.subr.bf16.mxu0 %v364_v5 }
  0x2b   :  { %258 = vmatpush3.bf16.msra.mxu0 %v283_v8 }
  0x2c   :  { %259 = vmatprep.subr.bf16.mxu0 %v364_v5 }
  0x2f   :  { %260 = vmatpush3.bf16.msra.mxu0 %v284_v9 }
  0x30   :  { %261 = vmatprep.subr.bf16.mxu0 %v364_v5 }
  0x33   :  { %262 = vmatpush3.bf16.msra.mxu0 %v285_v10 }
  0x34   :  { %263 = vmatprep.subr.bf16.mxu0 %v364_v5 }
  0x37   :  { %264 = vmatpush3.bf16.msra.mxu0 %v286_v11 }
  0x38   :  { %265 = vmatprep.subr.bf16.mxu0 %v364_v5 }
  0x3b   :  { %266 = vmatpush3.bf16.msra.mxu0 %v287_v12 }
  0xa7   :  { %v53_v13 = vpop.xlane.xlu0 %52 }
  0xa8   :  { %v62_v14 = vmul.f32 0.03125, %v53_v13 }
  0xa9   :  { %v59_v15 = vpop.xlane.xlu1 %58 }
  0xaa   :  { %v66_v16 = vmul.f32 %v62_v14, %v62_v14  ;;  %v64_v17 = vmul.f32 0.03125, %v59_v15  ;;  %v72_v29 = vsub.f32 %v50_v0, %v62_v14 }
  0xab   :  { %v55_v18 = vpop.xlane.xlu0 %54 }
  0xac   :  { %v68_v19 = vsub.f32 %v64_v17, %v66_v16  ;;  %v63_v20 = vmul.f32 0.03125, %v55_v18 }
  0xad   :  { %v61_v21 = vpop.xlane.xlu1 %60 }
  0xae   :  { %v70_v22 = vmax.f32 %v68_v19, 0.0  ;;  %v67_v23 = vmul.f32 %v63_v20, %v63_v20  ;;  %v65_v24 = vmul.f32 0.03125, %v61_v21  ;;  %v73_v33 = vsub.f32 %v51_v1, %v63_v20 }
  0xb0   :  { %v74_v25 = vadd.f32 1e-05, %v70_v22  ;;  %v69_v26 = vsub.f32 %v65_v24, %v67_v23 }
  0xb2   :  { %288 = vrsqrt.f32 %v74_v25  ;;  %v71_v27 = vmax.f32 %v69_v26, 0.0 }
  0xb4   :  { %v75_v28 = vadd.f32 1e-05, %v71_v27 }
  0xb6   :  { %290 = vrsqrt.f32 %v75_v28 }
  0xbf   :  { %v289_v30 = vpop.eup %288 }
  0xc0   :  { %v78_v31 = vmul.f32 %v289_v30, %v72_v29 }
  0xc2   :  { %v87_v36 = vmul.f32 %v231_v32, %v78_v31 }
  0xc3   :  { %v291_v34 = vpop.eup %290 }
  0xc4   :  { %v79_v35 = vmul.f32 %v291_v34, %v73_v33  ;;  %v96_v39 = vadd.f32 %v232_v37, %v87_v36 }
  0xc6   :  { %v88_v38 = vmul.f32 %v231_v32, %v79_v35 }
  0xc8   :  { %v97_v40 = vadd.f32 %v232_v37, %v88_v38 }
  0xca   :  { %v98_v41 = vpack.c.bf16 %v97_v40, %v96_v39 }
  0xcc   :  { %268 = vmatmul.mubr.bf16.vlgmr.msra.gmra.mxu0 %v98_v41 }
 0x18c   :  { %v204_v43 = vpop.f32.mrf.mxu0 }
 0x18d   :  { %v205_v44 = vadd.f32 %v233_v42, %v204_v43 }
 0x18e   :  { %v269_v45 = vpop.f32.mrf.mxu0 }
 0x18f   :  { %211 = vst [vmem:[#allocation7] sm:$0xff] %v205_v44 }
 0x190   :  { %v207_v46 = vpop.f32.mrf.mxu0 }
 0x191   :  { %v208_v47 = vadd.f32 %v233_v42, %v207_v46 }
 0x192   :  { %v270_v48 = vpop.f32.mrf.mxu0 }
 0x193   :  { %212 = vst [vmem:[#allocation7 + $0x8] sm:$0xff] %v208_v47 }
 0x194   :  { %343 = shalt.err (!%p340_p0)
}
 0x195   :  { %224 = dma.vmem_to_hbm [thread:$0]  %s219_s11, 256, %s426_s5, [#allocation4], %s359_s21, %s359_s21, %s360_s22  }
 0x196   :  { %356 = dma.done.wait [#allocation4], 256  }
 0x197   :  { %357 = vsyncadd [#allocation4], 4294967040 }
 0x198   :  { %228 = vsyncpa [#allocation3], 1 }
 0x199   :  { %229 = vsyncpa [#allocation6], 1 }
 0x19a   :  { %230 = vsyncpa [#allocation4], 1 }

</bundles_post_ra>
